<compile_context>
chip_gen: v5e
topology: v5e:2x2
jax: 0.10.0
libtpu: 0.0.40
codegen_flags: <defaults>
</compile_context>

<pallas_src>
import jax
import jax.numpy as jnp
from jax.experimental import pallas as pl
from jax.experimental.pallas import tpu as pltpu


def _round_up(x, m):
    return (x + m - 1) // m * m


# ---------------------------------------------------------------------------
# Fast path: both embedding tables resident in VMEM, branchless row gather.
# ---------------------------------------------------------------------------
def _vmem_gather_kernel(ids_ref, orig_ref, new_ref, out_ref):
    # ids_ref : SMEM (n_pad,) int32   — flattened token ids (scalar prefetch)
    # orig_ref: VMEM (V0, D)          — original table (constant block index -> resident)
    # new_ref : VMEM (V1, D)          — new table (constant block index -> resident)
    # out_ref : VMEM (tile, D)        — output block for this grid step
    tile = out_ref.shape[0]
    v0 = orig_ref.shape[0]
    base = pl.program_id(0) * tile
    for t in range(tile):  # fully unrolled: t is static
        tok = ids_ref[base + t]
        is_orig = tok < v0
        row_o = orig_ref[pl.ds(jnp.where(is_orig, tok, 0), 1), :]
        row_n = new_ref[pl.ds(jnp.where(is_orig, 0, tok - v0), 1), :]
        out_ref[pl.ds(t, 1), :] = jnp.where(is_orig, row_o, row_n)


# ---------------------------------------------------------------------------
# General path: tables stay in HBM, one row DMA per token directly into out_ref.
# ---------------------------------------------------------------------------
def _hbm_gather_kernel(ids_ref, orig_hbm, new_hbm, out_ref, sem):
    # ids_ref : SMEM (n_pad,) int32   — flattened token ids (scalar prefetch)
    # orig_hbm: HBM  (V0, D)          — raw ref, no auto-DMA
    # new_hbm : HBM  (V1, D)          — raw ref, no auto-DMA
    # out_ref : VMEM (tile, D)        — output block; DMA landing zone
    # sem     : DMA semaphore, shape (1,)
    tile = out_ref.shape[0]
    v0 = orig_hbm.shape[0]
    base = pl.program_id(0) * tile

    # Issue one row DMA per token, landing directly in out_ref; all copies share
    # one semaphore.  Fully unrolled so descriptor issue co-schedules across the
    # 2 scalar slots + 1 vector-misc slot.
    for t in range(tile):
        tok = ids_ref[base + t]

        @pl.when(tok < v0)
        def _():
            pltpu.make_async_copy(
                orig_hbm.at[pl.ds(tok, 1), :],
                out_ref.at[pl.ds(t, 1), :],
                sem.at[0],
            ).start()

        @pl.when(tok >= v0)
        def _():
            pltpu.make_async_copy(
                new_hbm.at[pl.ds(tok - v0, 1), :],
                out_ref.at[pl.ds(t, 1), :],
                sem.at[0],
            ).start()

    # Single aggregate drain: every copy above is (1, D) in out_ref's dtype, so one
    # wait on a (tile, D) descriptor (pure byte-count semaphore wait) covers all
    # `tile` row copies.  No per-row wait loop, no staging buffer copy.
    pltpu.make_async_copy(out_ref, out_ref, sem.at[0]).wait()


def combined_latent_embedding(
    input_ids,
    orig_table,
    new_table,
    *,
    token_tile=128,
    vmem_table_budget_bytes=8 * 1024 * 1024,
    force_hbm_gather=False,
):
    """input_ids: (B, S) integer ids; returns (B, S, D) in the tables' dtype."""
    b, s = input_ids.shape
    v0, d = orig_table.shape
    v1, d1 = new_table.shape
    assert d == d1, "embedding dims must match"
    assert orig_table.dtype == new_table.dtype, "table dtypes must match"
    assert v0 >= 1 and v1 >= 1, "both embedding tables must be non-empty"
    n_tok = b * s

    # Token tile: 128 rows keeps the output lane-dense and per-step overhead
    # amortized.  (For long sequences on v6e-class chips token_tile=256 halves the
    # per-step grid overhead; the issue loops are fully unrolled, so very large
    # tiles mostly cost compile time.)
    tile = token_tile if n_tok >= token_tile else _round_up(n_tok, 8)
    n_pad = _round_up(n_tok, tile)

    ids_flat = input_ids.reshape(n_tok).astype(jnp.int32)
    if n_pad != n_tok:
        # Padded tokens gather row 0 of the original table; sliced off below.
        ids_flat = jnp.pad(ids_flat, (0, n_pad - n_tok))
    # TODO(synk): for very long sequences (hundreds of K tokens) deliver ids as a
    # per-tile SMEM block instead of one whole-array scalar prefetch (1-D SMEM
    # arrays pad to next_pow2(4N) bytes).

    itemsize = jnp.dtype(orig_table.dtype).itemsize
    table_bytes = (v0 + v1) * d * itemsize
    use_vmem_tables = (table_bytes <= vmem_table_budget_bytes) and not force_hbm_gather

    bytes_accessed = n_pad * d * itemsize * 2 + n_pad * 4  # gather-in + store-out + ids
    if use_vmem_tables:
        bytes_accessed += table_bytes  # tables streamed to VMEM once

    compiler_params = pltpu.CompilerParams(
        # Token tiles are independent -> shard across both v7x TensorCores.
        dimension_semantics=("parallel",),
    )
    cost = pl.CostEstimate(flops=0, transcendentals=0, bytes_accessed=int(bytes_accessed))

    if use_vmem_tables:
        grid_spec = pltpu.PrefetchScalarGridSpec(
            num_scalar_prefetch=1,
            grid=(n_pad // tile,),
            in_specs=[
                # Whole tables, constant block index -> VMEM-resident across steps.
                pl.BlockSpec((v0, d), lambda i, ids: (0, 0)),
                pl.BlockSpec((v1, d), lambda i, ids: (0, 0)),
            ],
            out_specs=pl.BlockSpec((tile, d), lambda i, ids: (i, 0)),
            scratch_shapes=[],
        )
        kernel = _vmem_gather_kernel
    else:
        grid_spec = pltpu.PrefetchScalarGridSpec(
            num_scalar_prefetch=1,
            grid=(n_pad // tile,),
            in_specs=[
                pl.BlockSpec(memory_space=pl.ANY),  # original table stays in HBM
                pl.BlockSpec(memory_space=pl.ANY),  # new table stays in HBM
            ],
            out_specs=pl.BlockSpec((tile, d), lambda i, ids: (i, 0)),
            scratch_shapes=[pltpu.SemaphoreType.DMA((1,))],
        )
        kernel = _hbm_gather_kernel

    out_flat = pl.pallas_call(
        kernel,
        out_shape=jax.ShapeDtypeStruct((n_pad, d), orig_table.dtype),
        grid_spec=grid_spec,
        compiler_params=compiler_params,
        cost_estimate=cost,
    )(ids_flat, orig_table, new_table)

    if n_pad != n_tok:
        out_flat = out_flat[:n_tok]
    return out_flat.reshape(b, s, d)


def _reference(input_ids, orig_table, new_table):
    v0 = orig_table.shape[0]
    is_orig = input_ids < v0
    orig_gather = jnp.take(orig_table, jnp.clip(input_ids, 0, v0 - 1), axis=0)
    new_gather = jnp.take(
        new_table, jnp.clip(input_ids - v0, 0, new_table.shape[0] - 1), axis=0
    )
    return jnp.where(is_orig[..., None], orig_gather, new_gather)


if __name__ == "__main__":
    key = jax.random.PRNGKey(0)

    # --- test 1: small shapes, VMEM fast path, single grid step --------------
    k_orig, k_new, k_ids, key = jax.random.split(key, 4)
    B, S = 2, 8
    V_ORIG, V_NEW, D = 32, 16, 128
    orig_table = jax.random.normal(k_orig, (V_ORIG, D), dtype=jnp.float32)
    new_table = jax.random.normal(k_new, (V_NEW, D), dtype=jnp.float32)
    input_ids = jax.random.randint(k_ids, (B, S), 0, V_ORIG + V_NEW, dtype=jnp.int32)

    out = jax.block_until_ready(combined_latent_embedding(input_ids, orig_table, new_table))
    ref = _reference(input_ids, orig_table, new_table)
    assert out.shape == (B, S, D)
    assert jnp.allclose(out, ref, atol=1e-6, rtol=1e-6), "mismatch vs reference (test 1)"

    # --- test 2: VMEM fast path, multiple grid steps + token padding ----------
    k_orig, k_new, k_ids, key = jax.random.split(key, 4)
    B2, S2 = 3, 50                      # 150 tokens -> tile 128, padded to 256, grid=(2,)
    V_ORIG2, V_NEW2, D2 = 64, 32, 256
    orig_table2 = jax.random.normal(k_orig, (V_ORIG2, D2), dtype=jnp.float32)
    new_table2 = jax.random.normal(k_new, (V_NEW2, D2), dtype=jnp.float32)
    input_ids2 = jax.random.randint(k_ids, (B2, S2), 0, V_ORIG2 + V_NEW2, dtype=jnp.int32)

    out2 = jax.block_until_ready(
        combined_latent_embedding(input_ids2, orig_table2, new_table2)
    )
    ref2 = _reference(input_ids2, orig_table2, new_table2)
    assert out2.shape == (B2, S2, D2)
    assert jnp.allclose(out2, ref2, atol=1e-6, rtol=1e-6), "mismatch vs reference (test 2)"

    # --- test 3: forced HBM row-gather path (large-vocab code path) -----------
    out3 = jax.block_until_ready(
        combined_latent_embedding(
            input_ids2, orig_table2, new_table2, force_hbm_gather=True
        )
    )
    assert out3.shape == (B2, S2, D2)
    assert jnp.allclose(out3, ref2, atol=1e-6, rtol=1e-6), "mismatch vs reference (test 3)"

    print("KERNEL_OK")
</pallas_src>

<mosaic_0001>
module attributes {stable_mosaic.version = 11 : i64} {
  func.func @_vmem_gather_kernel(%arg0: i32, %arg1: memref<16xi32, #tpu.memory_space<smem>>, %arg2: memref<32x128xf32, #tpu.memory_space<vmem>>, %arg3: memref<16x128xf32, #tpu.memory_space<vmem>>, %arg4: memref<16x128xf32, #tpu.memory_space<vmem>>) attributes {dimension_semantics = [#tpu.dimension_semantics<parallel>], iteration_bounds = array<i64: 1>, scalar_prefetch = 1 : i64, scratch_operands = 0 : i64, tpu.core_type = #tpu.core_type<tc>, window_params = [{pipeline_mode = #tpu.pipeline_mode<synchronous>, transform_indices = @transform_0, window_bounds = array<i64: 32, 128>}, {pipeline_mode = #tpu.pipeline_mode<synchronous>, transform_indices = @transform_1, window_bounds = array<i64: 16, 128>}, {transform_indices = @transform_2, window_bounds = array<i64: 16, 128>}]} {
    %c16_i32 = arith.constant 16 : i32
    %0 = arith.muli %arg0, %c16_i32 : i32
    %c0_i32 = arith.constant 0 : i32
    %1 = arith.addi %0, %c0_i32 : i32
    %2 = arith.index_cast %1 : i32 to index
    %3 = memref.load %arg1[%2] : memref<16xi32, #tpu.memory_space<smem>>
    %c32_i32 = arith.constant 32 : i32
    %4 = arith.cmpi slt, %3, %c32_i32 : i32
    %c0_i32_0 = arith.constant 0 : i32
    %5 = arith.select %4, %3, %c0_i32_0 : i32
    %6 = arith.index_cast %5 : i32 to index
    %c0 = arith.constant 0 : index
    %7 = vector.load %arg2[%6, %c0] : memref<32x128xf32, #tpu.memory_space<vmem>>, vector<1x128xf32>
    %c32_i32_1 = arith.constant 32 : i32
    %8 = arith.subi %3, %c32_i32_1 : i32
    %c0_i32_2 = arith.constant 0 : i32
    %9 = arith.select %4, %c0_i32_2, %8 : i32
    %10 = arith.index_cast %9 : i32 to index
    %c0_3 = arith.constant 0 : index
    %11 = vector.load %arg3[%10, %c0_3] : memref<16x128xf32, #tpu.memory_space<vmem>>, vector<1x128xf32>
    %12 = arith.select %4, %7, %11 : vector<1x128xf32>
    %c0_4 = arith.constant 0 : index
    %c0_5 = arith.constant 0 : index
    %13 = vector.load %arg4[%c0_4, %c0_5] : memref<16x128xf32, #tpu.memory_space<vmem>>, vector<1x128xf32>
    tpu.vector_store %arg4[%c0_4, %c0_5], %12 {strides = array<i32>} : memref<16x128xf32, #tpu.memory_space<vmem>>, vector<1x128xf32>,
    %c1_i32 = arith.constant 1 : i32
    %14 = arith.addi %0, %c1_i32 : i32
    %15 = arith.index_cast %14 : i32 to index
    %16 = memref.load %arg1[%15] : memref<16xi32, #tpu.memory_space<smem>>
    %c32_i32_6 = arith.constant 32 : i32
    %17 = arith.cmpi slt, %16, %c32_i32_6 : i32
    %c0_i32_7 = arith.constant 0 : i32
    %18 = arith.select %17, %16, %c0_i32_7 : i32
    %19 = arith.index_cast %18 : i32 to index
    %c0_8 = arith.constant 0 : index
    %20 = vector.load %arg2[%19, %c0_8] : memref<32x128xf32, #tpu.memory_space<vmem>>, vector<1x128xf32>
    %c32_i32_9 = arith.constant 32 : i32
    %21 = arith.subi %16, %c32_i32_9 : i32
    %c0_i32_10 = arith.constant 0 : i32
    %22 = arith.select %17, %c0_i32_10, %21 : i32
    %23 = arith.index_cast %22 : i32 to index
    %c0_11 = arith.constant 0 : index
    %24 = vector.load %arg3[%23, %c0_11] : memref<16x128xf32, #tpu.memory_space<vmem>>, vector<1x128xf32>
    %25 = arith.select %17, %20, %24 : vector<1x128xf32>
    %c1 = arith.constant 1 : index
    %c0_12 = arith.constant 0 : index
    %26 = vector.load %arg4[%c1, %c0_12] : memref<16x128xf32, #tpu.memory_space<vmem>>, vector<1x128xf32>
    tpu.vector_store %arg4[%c1, %c0_12], %25 {strides = array<i32>} : memref<16x128xf32, #tpu.memory_space<vmem>>, vector<1x128xf32>,
    %c2_i32 = arith.constant 2 : i32
    %27 = arith.addi %0, %c2_i32 : i32
    %28 = arith.index_cast %27 : i32 to index
    %29 = memref.load %arg1[%28] : memref<16xi32, #tpu.memory_space<smem>>
    %c32_i32_13 = arith.constant 32 : i32
    %30 = arith.cmpi slt, %29, %c32_i32_13 : i32
    %c0_i32_14 = arith.constant 0 : i32
    %31 = arith.select %30, %29, %c0_i32_14 : i32
    %32 = arith.index_cast %31 : i32 to index
    %c0_15 = arith.constant 0 : index
    %33 = vector.load %arg2[%32, %c0_15] : memref<32x128xf32, #tpu.memory_space<vmem>>, vector<1x128xf32>
    %c32_i32_16 = arith.constant 32 : i32
    %34 = arith.subi %29, %c32_i32_16 : i32
    %c0_i32_17 = arith.constant 0 : i32
    %35 = arith.select %30, %c0_i32_17, %34 : i32
    %36 = arith.index_cast %35 : i32 to index
    %c0_18 = arith.constant 0 : index
    %37 = vector.load %arg3[%36, %c0_18] : memref<16x128xf32, #tpu.memory_space<vmem>>, vector<1x128xf32>
    %38 = arith.select %30, %33, %37 : vector<1x128xf32>
    %c2 = arith.constant 2 : index
    %c0_19 = arith.constant 0 : index
    %39 = vector.load %arg4[%c2, %c0_19] : memref<16x128xf32, #tpu.memory_space<vmem>>, vector<1x128xf32>
    tpu.vector_store %arg4[%c2, %c0_19], %38 {strides = array<i32>} : memref<16x128xf32, #tpu.memory_space<vmem>>, vector<1x128xf32>,
    %c3_i32 = arith.constant 3 : i32
    %40 = arith.addi %0, %c3_i32 : i32
    %41 = arith.index_cast %40 : i32 to index
    %42 = memref.load %arg1[%41] : memref<16xi32, #tpu.memory_space<smem>>
    %c32_i32_20 = arith.constant 32 : i32
    %43 = arith.cmpi slt, %42, %c32_i32_20 : i32
    %c0_i32_21 = arith.constant 0 : i32
    %44 = arith.select %43, %42, %c0_i32_21 : i32
    %45 = arith.index_cast %44 : i32 to index
    %c0_22 = arith.constant 0 : index
    %46 = vector.load %arg2[%45, %c0_22] : memref<32x128xf32, #tpu.memory_space<vmem>>, vector<1x128xf32>
    %c32_i32_23 = arith.constant 32 : i32
    %47 = arith.subi %42, %c32_i32_23 : i32
    %c0_i32_24 = arith.constant 0 : i32
    %48 = arith.select %43, %c0_i32_24, %47 : i32
    %49 = arith.index_cast %48 : i32 to index
    %c0_25 = arith.constant 0 : index
    %50 = vector.load %arg3[%49, %c0_25] : memref<16x128xf32, #tpu.memory_space<vmem>>, vector<1x128xf32>
    %51 = arith.select %43, %46, %50 : vector<1x128xf32>
    %c3 = arith.constant 3 : index
    %c0_26 = arith.constant 0 : index
    %52 = vector.load %arg4[%c3, %c0_26] : memref<16x128xf32, #tpu.memory_space<vmem>>, vector<1x128xf32>
    tpu.vector_store %arg4[%c3, %c0_26], %51 {strides = array<i32>} : memref<16x128xf32, #tpu.memory_space<vmem>>, vector<1x128xf32>,
    %c4_i32 = arith.constant 4 : i32
    %53 = arith.addi %0, %c4_i32 : i32
    %54 = arith.index_cast %53 : i32 to index
    %55 = memref.load %arg1[%54] : memref<16xi32, #tpu.memory_space<smem>>
    %c32_i32_27 = arith.constant 32 : i32
    %56 = arith.cmpi slt, %55, %c32_i32_27 : i32
    %c0_i32_28 = arith.constant 0 : i32
    %57 = arith.select %56, %55, %c0_i32_28 : i32
    %58 = arith.index_cast %57 : i32 to index
    %c0_29 = arith.constant 0 : index
    %59 = vector.load %arg2[%58, %c0_29] : memref<32x128xf32, #tpu.memory_space<vmem>>, vector<1x128xf32>
    %c32_i32_30 = arith.constant 32 : i32
    %60 = arith.subi %55, %c32_i32_30 : i32
    %c0_i32_31 = arith.constant 0 : i32
    %61 = arith.select %56, %c0_i32_31, %60 : i32
    %62 = arith.index_cast %61 : i32 to index
    %c0_32 = arith.constant 0 : index
    %63 = vector.load %arg3[%62, %c0_32] : memref<16x128xf32, #tpu.memory_space<vmem>>, vector<1x128xf32>
    %64 = arith.select %56, %59, %63 : vector<1x128xf32>
    %c4 = arith.constant 4 : index
    %c0_33 = arith.constant 0 : index
    %65 = vector.load %arg4[%c4, %c0_33] : memref<16x128xf32, #tpu.memory_space<vmem>>, vector<1x128xf32>
    tpu.vector_store %arg4[%c4, %c0_33], %64 {strides = array<i32>} : memref<16x128xf32, #tpu.memory_space<vmem>>, vector<1x128xf32>,
    %c5_i32 = arith.constant 5 : i32
    %66 = arith.addi %0, %c5_i32 : i32
    %67 = arith.index_cast %66 : i32 to index
    %68 = memref.load %arg1[%67] : memref<16xi32, #tpu.memory_space<smem>>
    %c32_i32_34 = arith.constant 32 : i32
    %69 = arith.cmpi slt, %68, %c32_i32_34 : i32
    %c0_i32_35 = arith.constant 0 : i32
    %70 = arith.select %69, %68, %c0_i32_35 : i32
    %71 = arith.index_cast %70 : i32 to index
    %c0_36 = arith.constant 0 : index
    %72 = vector.load %arg2[%71, %c0_36] : memref<32x128xf32, #tpu.memory_space<vmem>>, vector<1x128xf32>
    %c32_i32_37 = arith.constant 32 : i32
    %73 = arith.subi %68, %c32_i32_37 : i32
    %c0_i32_38 = arith.constant 0 : i32
    %74 = arith.select %69, %c0_i32_38, %73 : i32
    %75 = arith.index_cast %74 : i32 to index
    %c0_39 = arith.constant 0 : index
    %76 = vector.load %arg3[%75, %c0_39] : memref<16x128xf32, #tpu.memory_space<vmem>>, vector<1x128xf32>
    %77 = arith.select %69, %72, %76 : vector<1x128xf32>
    %c5 = arith.constant 5 : index
    %c0_40 = arith.constant 0 : index
    %78 = vector.load %arg4[%c5, %c0_40] : memref<16x128xf32, #tpu.memory_space<vmem>>, vector<1x128xf32>
    tpu.vector_store %arg4[%c5, %c0_40], %77 {strides = array<i32>} : memref<16x128xf32, #tpu.memory_space<vmem>>, vector<1x128xf32>,
    %c6_i32 = arith.constant 6 : i32
    %79 = arith.addi %0, %c6_i32 : i32
    %80 = arith.index_cast %79 : i32 to index
    %81 = memref.load %arg1[%80] : memref<16xi32, #tpu.memory_space<smem>>
    %c32_i32_41 = arith.constant 32 : i32
    %82 = arith.cmpi slt, %81, %c32_i32_41 : i32
    %c0_i32_42 = arith.constant 0 : i32
    %83 = arith.select %82, %81, %c0_i32_42 : i32
    %84 = arith.index_cast %83 : i32 to index
    %c0_43 = arith.constant 0 : index
    %85 = vector.load %arg2[%84, %c0_43] : memref<32x128xf32, #tpu.memory_space<vmem>>, vector<1x128xf32>
    %c32_i32_44 = arith.constant 32 : i32
    %86 = arith.subi %81, %c32_i32_44 : i32
    %c0_i32_45 = arith.constant 0 : i32
    %87 = arith.select %82, %c0_i32_45, %86 : i32
    %88 = arith.index_cast %87 : i32 to index
    %c0_46 = arith.constant 0 : index
    %89 = vector.load %arg3[%88, %c0_46] : memref<16x128xf32, #tpu.memory_space<vmem>>, vector<1x128xf32>
    %90 = arith.select %82, %85, %89 : vector<1x128xf32>
    %c6 = arith.constant 6 : index
    %c0_47 = arith.constant 0 : index
    %91 = vector.load %arg4[%c6, %c0_47] : memref<16x128xf32, #tpu.memory_space<vmem>>, vector<1x128xf32>
    tpu.vector_store %arg4[%c6, %c0_47], %90 {strides = array<i32>} : memref<16x128xf32, #tpu.memory_space<vmem>>, vector<1x128xf32>,
    %c7_i32 = arith.constant 7 : i32
    %92 = arith.addi %0, %c7_i32 : i32
    %93 = arith.index_cast %92 : i32 to index
    %94 = memref.load %arg1[%93] : memref<16xi32, #tpu.memory_space<smem>>
    %c32_i32_48 = arith.constant 32 : i32
    %95 = arith.cmpi slt, %94, %c32_i32_48 : i32
    %c0_i32_49 = arith.constant 0 : i32
    %96 = arith.select %95, %94, %c0_i32_49 : i32
    %97 = arith.index_cast %96 : i32 to index
    %c0_50 = arith.constant 0 : index
    %98 = vector.load %arg2[%97, %c0_50] : memref<32x128xf32, #tpu.memory_space<vmem>>, vector<1x128xf32>
    %c32_i32_51 = arith.constant 32 : i32
    %99 = arith.subi %94, %c32_i32_51 : i32
    %c0_i32_52 = arith.constant 0 : i32
    %100 = arith.select %95, %c0_i32_52, %99 : i32
    %101 = arith.index_cast %100 : i32 to index
    %c0_53 = arith.constant 0 : index
    %102 = vector.load %arg3[%101, %c0_53] : memref<16x128xf32, #tpu.memory_space<vmem>>, vector<1x128xf32>
    %103 = arith.select %95, %98, %102 : vector<1x128xf32>
    %c7 = arith.constant 7 : index
    %c0_54 = arith.constant 0 : index
    %104 = vector.load %arg4[%c7, %c0_54] : memref<16x128xf32, #tpu.memory_space<vmem>>, vector<1x128xf32>
    tpu.vector_store %arg4[%c7, %c0_54], %103 {strides = array<i32>} : memref<16x128xf32, #tpu.memory_space<vmem>>, vector<1x128xf32>,
    %c8_i32 = arith.constant 8 : i32
    %105 = arith.addi %0, %c8_i32 : i32
    %106 = arith.index_cast %105 : i32 to index
    %107 = memref.load %arg1[%106] : memref<16xi32, #tpu.memory_space<smem>>
    %c32_i32_55 = arith.constant 32 : i32
    %108 = arith.cmpi slt, %107, %c32_i32_55 : i32
    %c0_i32_56 = arith.constant 0 : i32
    %109 = arith.select %108, %107, %c0_i32_56 : i32
    %110 = arith.index_cast %109 : i32 to index
    %c0_57 = arith.constant 0 : index
    %111 = vector.load %arg2[%110, %c0_57] : memref<32x128xf32, #tpu.memory_space<vmem>>, vector<1x128xf32>
    %c32_i32_58 = arith.constant 32 : i32
    %112 = arith.subi %107, %c32_i32_58 : i32
    %c0_i32_59 = arith.constant 0 : i32
    %113 = arith.select %108, %c0_i32_59, %112 : i32
    %114 = arith.index_cast %113 : i32 to index
    %c0_60 = arith.constant 0 : index
    %115 = vector.load %arg3[%114, %c0_60] : memref<16x128xf32, #tpu.memory_space<vmem>>, vector<1x128xf32>
    %116 = arith.select %108, %111, %115 : vector<1x128xf32>
    %c8 = arith.constant 8 : index
    %c0_61 = arith.constant 0 : index
    %117 = vector.load %arg4[%c8, %c0_61] : memref<16x128xf32, #tpu.memory_space<vmem>>, vector<1x128xf32>
    tpu.vector_store %arg4[%c8, %c0_61], %116 {strides = array<i32>} : memref<16x128xf32, #tpu.memory_space<vmem>>, vector<1x128xf32>,
    %c9_i32 = arith.constant 9 : i32
    %118 = arith.addi %0, %c9_i32 : i32
    %119 = arith.index_cast %118 : i32 to index
    %120 = memref.load %arg1[%119] : memref<16xi32, #tpu.memory_space<smem>>
    %c32_i32_62 = arith.constant 32 : i32
    %121 = arith.cmpi slt, %120, %c32_i32_62 : i32
    %c0_i32_63 = arith.constant 0 : i32
    %122 = arith.select %121, %120, %c0_i32_63 : i32
    %123 = arith.index_cast %122 : i32 to index
    %c0_64 = arith.constant 0 : index
    %124 = vector.load %arg2[%123, %c0_64] : memref<32x128xf32, #tpu.memory_space<vmem>>, vector<1x128xf32>
    %c32_i32_65 = arith.constant 32 : i32
    %125 = arith.subi %120, %c32_i32_65 : i32
    %c0_i32_66 = arith.constant 0 : i32
    %126 = arith.select %121, %c0_i32_66, %125 : i32
    %127 = arith.index_cast %126 : i32 to index
    %c0_67 = arith.constant 0 : index
    %128 = vector.load %arg3[%127, %c0_67] : memref<16x128xf32, #tpu.memory_space<vmem>>, vector<1x128xf32>
    %129 = arith.select %121, %124, %128 : vector<1x128xf32>
    %c9 = arith.constant 9 : index
    %c0_68 = arith.constant 0 : index
    %130 = vector.load %arg4[%c9, %c0_68] : memref<16x128xf32, #tpu.memory_space<vmem>>, vector<1x128xf32>
    tpu.vector_store %arg4[%c9, %c0_68], %129 {strides = array<i32>} : memref<16x128xf32, #tpu.memory_space<vmem>>, vector<1x128xf32>,
    %c10_i32 = arith.constant 10 : i32
    %131 = arith.addi %0, %c10_i32 : i32
    %132 = arith.index_cast %131 : i32 to index
    %133 = memref.load %arg1[%132] : memref<16xi32, #tpu.memory_space<smem>>
    %c32_i32_69 = arith.constant 32 : i32
    %134 = arith.cmpi slt, %133, %c32_i32_69 : i32
    %c0_i32_70 = arith.constant 0 : i32
    %135 = arith.select %134, %133, %c0_i32_70 : i32
    %136 = arith.index_cast %135 : i32 to index
    %c0_71 = arith.constant 0 : index
    %137 = vector.load %arg2[%136, %c0_71] : memref<32x128xf32, #tpu.memory_space<vmem>>, vector<1x128xf32>
    %c32_i32_72 = arith.constant 32 : i32
    %138 = arith.subi %133, %c32_i32_72 : i32
    %c0_i32_73 = arith.constant 0 : i32
    %139 = arith.select %134, %c0_i32_73, %138 : i32
    %140 = arith.index_cast %139 : i32 to index
    %c0_74 = arith.constant 0 : index
    %141 = vector.load %arg3[%140, %c0_74] : memref<16x128xf32, #tpu.memory_space<vmem>>, vector<1x128xf32>
    %142 = arith.select %134, %137, %141 : vector<1x128xf32>
    %c10 = arith.constant 10 : index
    %c0_75 = arith.constant 0 : index
    %143 = vector.load %arg4[%c10, %c0_75] : memref<16x128xf32, #tpu.memory_space<vmem>>, vector<1x128xf32>
    tpu.vector_store %arg4[%c10, %c0_75], %142 {strides = array<i32>} : memref<16x128xf32, #tpu.memory_space<vmem>>, vector<1x128xf32>,
    %c11_i32 = arith.constant 11 : i32
    %144 = arith.addi %0, %c11_i32 : i32
    %145 = arith.index_cast %144 : i32 to index
    %146 = memref.load %arg1[%145] : memref<16xi32, #tpu.memory_space<smem>>
    %c32_i32_76 = arith.constant 32 : i32
    %147 = arith.cmpi slt, %146, %c32_i32_76 : i32
    %c0_i32_77 = arith.constant 0 : i32
    %148 = arith.select %147, %146, %c0_i32_77 : i32
    %149 = arith.index_cast %148 : i32 to index
    %c0_78 = arith.constant 0 : index
    %150 = vector.load %arg2[%149, %c0_78] : memref<32x128xf32, #tpu.memory_space<vmem>>, vector<1x128xf32>
    %c32_i32_79 = arith.constant 32 : i32
    %151 = arith.subi %146, %c32_i32_79 : i32
    %c0_i32_80 = arith.constant 0 : i32
    %152 = arith.select %147, %c0_i32_80, %151 : i32
    %153 = arith.index_cast %152 : i32 to index
    %c0_81 = arith.constant 0 : index
    %154 = vector.load %arg3[%153, %c0_81] : memref<16x128xf32, #tpu.memory_space<vmem>>, vector<1x128xf32>
    %155 = arith.select %147, %150, %154 : vector<1x128xf32>
    %c11 = arith.constant 11 : index
    %c0_82 = arith.constant 0 : index
    %156 = vector.load %arg4[%c11, %c0_82] : memref<16x128xf32, #tpu.memory_space<vmem>>, vector<1x128xf32>
    tpu.vector_store %arg4[%c11, %c0_82], %155 {strides = array<i32>} : memref<16x128xf32, #tpu.memory_space<vmem>>, vector<1x128xf32>,
    %c12_i32 = arith.constant 12 : i32
    %157 = arith.addi %0, %c12_i32 : i32
    %158 = arith.index_cast %157 : i32 to index
    %159 = memref.load %arg1[%158] : memref<16xi32, #tpu.memory_space<smem>>
    %c32_i32_83 = arith.constant 32 : i32
    %160 = arith.cmpi slt, %159, %c32_i32_83 : i32
    %c0_i32_84 = arith.constant 0 : i32
    %161 = arith.select %160, %159, %c0_i32_84 : i32
    %162 = arith.index_cast %161 : i32 to index
    %c0_85 = arith.constant 0 : index
    %163 = vector.load %arg2[%162, %c0_85] : memref<32x128xf32, #tpu.memory_space<vmem>>, vector<1x128xf32>
    %c32_i32_86 = arith.constant 32 : i32
    %164 = arith.subi %159, %c32_i32_86 : i32
    %c0_i32_87 = arith.constant 0 : i32
    %165 = arith.select %160, %c0_i32_87, %164 : i32
    %166 = arith.index_cast %165 : i32 to index
    %c0_88 = arith.constant 0 : index
    %167 = vector.load %arg3[%166, %c0_88] : memref<16x128xf32, #tpu.memory_space<vmem>>, vector<1x128xf32>
    %168 = arith.select %160, %163, %167 : vector<1x128xf32>
    %c12 = arith.constant 12 : index
    %c0_89 = arith.constant 0 : index
    %169 = vector.load %arg4[%c12, %c0_89] : memref<16x128xf32, #tpu.memory_space<vmem>>, vector<1x128xf32>
    tpu.vector_store %arg4[%c12, %c0_89], %168 {strides = array<i32>} : memref<16x128xf32, #tpu.memory_space<vmem>>, vector<1x128xf32>,
    %c13_i32 = arith.constant 13 : i32
    %170 = arith.addi %0, %c13_i32 : i32
    %171 = arith.index_cast %170 : i32 to index
    %172 = memref.load %arg1[%171] : memref<16xi32, #tpu.memory_space<smem>>
    %c32_i32_90 = arith.constant 32 : i32
    %173 = arith.cmpi slt, %172, %c32_i32_90 : i32
    %c0_i32_91 = arith.constant 0 : i32
    %174 = arith.select %173, %172, %c0_i32_91 : i32
    %175 = arith.index_cast %174 : i32 to index
    %c0_92 = arith.constant 0 : index
    %176 = vector.load %arg2[%175, %c0_92] : memref<32x128xf32, #tpu.memory_space<vmem>>, vector<1x128xf32>
    %c32_i32_93 = arith.constant 32 : i32
    %177 = arith.subi %172, %c32_i32_93 : i32
    %c0_i32_94 = arith.constant 0 : i32
    %178 = arith.select %173, %c0_i32_94, %177 : i32
    %179 = arith.index_cast %178 : i32 to index
    %c0_95 = arith.constant 0 : index
    %180 = vector.load %arg3[%179, %c0_95] : memref<16x128xf32, #tpu.memory_space<vmem>>, vector<1x128xf32>
    %181 = arith.select %173, %176, %180 : vector<1x128xf32>
    %c13 = arith.constant 13 : index
    %c0_96 = arith.constant 0 : index
    %182 = vector.load %arg4[%c13, %c0_96] : memref<16x128xf32, #tpu.memory_space<vmem>>, vector<1x128xf32>
    tpu.vector_store %arg4[%c13, %c0_96], %181 {strides = array<i32>} : memref<16x128xf32, #tpu.memory_space<vmem>>, vector<1x128xf32>,
    %c14_i32 = arith.constant 14 : i32
    %183 = arith.addi %0, %c14_i32 : i32
    %184 = arith.index_cast %183 : i32 to index
    %185 = memref.load %arg1[%184] : memref<16xi32, #tpu.memory_space<smem>>
    %c32_i32_97 = arith.constant 32 : i32
    %186 = arith.cmpi slt, %185, %c32_i32_97 : i32
    %c0_i32_98 = arith.constant 0 : i32
    %187 = arith.select %186, %185, %c0_i32_98 : i32
    %188 = arith.index_cast %187 : i32 to index
    %c0_99 = arith.constant 0 : index
    %189 = vector.load %arg2[%188, %c0_99] : memref<32x128xf32, #tpu.memory_space<vmem>>, vector<1x128xf32>
    %c32_i32_100 = arith.constant 32 : i32
    %190 = arith.subi %185, %c32_i32_100 : i32
    %c0_i32_101 = arith.constant 0 : i32
    %191 = arith.select %186, %c0_i32_101, %190 : i32
    %192 = arith.index_cast %191 : i32 to index
    %c0_102 = arith.constant 0 : index
    %193 = vector.load %arg3[%192, %c0_102] : memref<16x128xf32, #tpu.memory_space<vmem>>, vector<1x128xf32>
    %194 = arith.select %186, %189, %193 : vector<1x128xf32>
    %c14 = arith.constant 14 : index
    %c0_103 = arith.constant 0 : index
    %195 = vector.load %arg4[%c14, %c0_103] : memref<16x128xf32, #tpu.memory_space<vmem>>, vector<1x128xf32>
    tpu.vector_store %arg4[%c14, %c0_103], %194 {strides = array<i32>} : memref<16x128xf32, #tpu.memory_space<vmem>>, vector<1x128xf32>,
    %c15_i32 = arith.constant 15 : i32
    %196 = arith.addi %0, %c15_i32 : i32
    %197 = arith.index_cast %196 : i32 to index
    %198 = memref.load %arg1[%197] : memref<16xi32, #tpu.memory_space<smem>>
    %c32_i32_104 = arith.constant 32 : i32
    %199 = arith.cmpi slt, %198, %c32_i32_104 : i32
    %c0_i32_105 = arith.constant 0 : i32
    %200 = arith.select %199, %198, %c0_i32_105 : i32
    %201 = arith.index_cast %200 : i32 to index
    %c0_106 = arith.constant 0 : index
    %202 = vector.load %arg2[%201, %c0_106] : memref<32x128xf32, #tpu.memory_space<vmem>>, vector<1x128xf32>
    %c32_i32_107 = arith.constant 32 : i32
    %203 = arith.subi %198, %c32_i32_107 : i32
    %c0_i32_108 = arith.constant 0 : i32
    %204 = arith.select %199, %c0_i32_108, %203 : i32
    %205 = arith.index_cast %204 : i32 to index
    %c0_109 = arith.constant 0 : index
    %206 = vector.load %arg3[%205, %c0_109] : memref<16x128xf32, #tpu.memory_space<vmem>>, vector<1x128xf32>
    %207 = arith.select %199, %202, %206 : vector<1x128xf32>
    %c15 = arith.constant 15 : index
    %c0_110 = arith.constant 0 : index
    %208 = vector.load %arg4[%c15, %c0_110] : memref<16x128xf32, #tpu.memory_space<vmem>>, vector<1x128xf32>
    tpu.vector_store %arg4[%c15, %c0_110], %207 {strides = array<i32>} : memref<16x128xf32, #tpu.memory_space<vmem>>, vector<1x128xf32>,
    return
  }
  func.func @transform_0(%arg0: i32, %arg1: memref<16xi32, #tpu.memory_space<smem>>) -> (i32, i32) {
    %c0_i32 = arith.constant 0 : i32
    %c0_i32_0 = arith.constant 0 : i32
    %c0_i32_1 = arith.constant 0 : i32
    return %c0_i32, %c0_i32_0 : i32, i32
  }
  func.func @transform_1(%arg0: i32, %arg1: memref<16xi32, #tpu.memory_space<smem>>) -> (i32, i32) {
    %c0_i32 = arith.constant 0 : i32
    %c0_i32_0 = arith.constant 0 : i32
    %c0_i32_1 = arith.constant 0 : i32
    return %c0_i32, %c0_i32_0 : i32, i32
  }
  func.func @transform_2(%arg0: i32, %arg1: memref<16xi32, #tpu.memory_space<smem>>) -> (i32, i32) {
    %c0_i32 = arith.constant 0 : i32
    %c0_i32_0 = arith.constant 0 : i32
    return %arg0, %c0_i32 : i32, i32
  }
}

</mosaic_0001>

<bundles_post_ra>
// kernel: tpu_custom_call.1
= control target key start
LH: loop header
LB: loop body
LE: loop exit
PB: predicated region body
PF: predicated region fallthrough
CT: control target
= control target key end

     0   :  { %s474_s15 = smov [#allocation3]   ;;  %s667_s0 = inlined_call_operand.hbm [shape: s32[16], index: 0, kind: input, shape index: {}]   ;;  %s668_s1 = inlined_call_operand.hbm [shape: f32[32,128], index: 1, kind: input, shape index: {}]   ;;  %s669_s2 = inlined_call_operand.hbm [shape: f32[16,128], index: 2, kind: input, shape index: {}]   ;;  %s670_s3 = inlined_call_operand.hbm [shape: f32[16,128], index: 3, kind: output, shape index: {}]  }
   0x1   :  { %s9_s14 = sshll.u32 %s667_s0, 4  ;;  %s10_s14 = int_to_ptr.hbm [resolvable:$true] %s9_s14 }
   0x2   :  { %12 = dma.hbm_to_smem %s10_s14, 16, %s474_s15, [#allocation2] }
   0x3   :  { %466 = dma.done.wait [#allocation2], 16 }
   0x4   :  { %467 = vsyncadd [#allocation2], 4294967280 }
   0x5   :  { %15 = sfence }
   0x6   :  { %16 = vsyncpa [#allocation5], 0 }
   0x7   :  { %17 = vsyncpa [#allocation8], 0 }
   0x8   :  { %18 = vsyncpa [#allocation6], 0  ;;  %s23_s18 = sshll.u32 %s668_s1, 4  ;;  %s475_s19 = smov [#allocation4]   ;;  %s24_s18 = int_to_ptr.hbm [resolvable:$true] %s23_s18 }
   0x9   :  { %s25_s20 = sshll.u32 %s475_s19, 4  ;;  %s36_s0 = sshll.u32 %s669_s2, 4  ;;  %s26_s20 = int_to_ptr.vmem [resolvable:$true] %s25_s20  ;;  %s37_s0 = int_to_ptr.hbm [resolvable:$true] %s36_s0 }
   0xa   :  { %s476_s23 = smov 128   ;;  %s477_s24 = smov 8  }
   0xb   :  { %31 = dma.hbm_to_vmem [thread:$0]  %s24_s18, 512, %s26_s20, [#allocation5], %s476_s23, %s476_s23, %s477_s24  }
   0xc   :  { %s478_s25 = smov [#allocation7]  }
   0xd   :  { %s38_s26 = sshll.u32 %s478_s25, 4  ;;  %s39_s26 = int_to_ptr.vmem [resolvable:$true] %s38_s26 }
   0xe   :  { %44 = dma.hbm_to_vmem [thread:$0]  %s37_s0, 256, %s39_s26, [#allocation8], %s476_s23, %s476_s23, %s477_s24  }
   0xf   :  { %468 = dma.done.wait [#allocation5], 512  }
  0x10   :  { %469 = vsyncadd [#allocation5], 4294966784 }
  0x11   :  { %470 = dma.done.wait [#allocation8], 256  }
  0x12   :  { %471 = vsyncadd [#allocation8], 4294967040  ;;  %s54_s1 = sld [smem:[#allocation3]] }
  0x13   :  { %s346_s2 = sld [smem:[#allocation3 + $0x1]] }
  0x14   :  { %s515_s27 = sld [smem:[#allocation3 + $0x2]] }
  0x15   :  { %s517_s28 = sld [smem:[#allocation3 + $0x3]] }
  0x16   :  { %s519_s29 = sld [smem:[#allocation3 + $0x4]] }
  0x17   :  { %s521_s30 = sld [smem:[#allocation3 + $0x5]] }
  0x18   :  { %p55_p0 = scmp.lt.s32.totalorder %s54_s1, 32  ;;  %s345_s4 = sadd.s32 4294967264, %s54_s1 }
  0x19   :  { %p70_p1 = scmp.lt.s32.totalorder %s346_s2, 32  ;;  %s347_s5 = sadd.s32 4294967264, %s346_s2 }
  0x1a   :  { %s672_s1 = smov (!%p55_p0, %s54_s1), 0  ;;  %s674_s4 = smov (%p55_p0, %s345_s4), 0 }
  0x1b   :  { %p85_p2 = scmp.lt.s32.totalorder %s515_s27, 32  ;;  %s349_s6 = sadd.s32 4294967264, %s515_s27 }
  0x1c   :  { %s63_s7 = scalar_select %p55_p0, 1, 0 }
  0x1d   :  { %s57_s8 = scalar_lea.vmem [#allocation4], %s672_s1  ;;  %s61_s9 = scalar_lea.vmem [#allocation7], %s674_s4 }
  0x1e   :  { %v58_v0 = vld [vmem:[%s57_s8] sm:$0x1]  ;;  %s71_s10 = scalar_select %p70_p1, %s346_s2, 0  ;;  %v64_v2 = vstv %s63_s7 }
  0x1f   :  { %v62_v1 = vld [vmem:[%s61_s9] sm:$0x1]  ;;  %s676_s5 = smov (%p70_p1, %s347_s5), 0  ;;  %vm65_vm0 = vcmp.eq.s32.totalorder %v64_v2, 1  ;;  %p100_p3 = scmp.lt.s32.totalorder %s517_s28, 32 }
  0x20   :  { %v66_v3 = vsel %vm65_vm0, %v58_v0, %v62_v1  ;;  %s351_s11 = sadd.s32 4294967264, %s517_s28  ;;  %s72_s13 = scalar_lea.vmem [#allocation4], %s71_s10 }
  0x21   :  { %67 = vst [vmem:[#allocation9] sm:$0x1] %v66_v3  ;;  %s78_s12 = scalar_select %p70_p1, 1, 0  ;;  %v73_v4 = vld [vmem:[%s72_s13] sm:$0x1] }
  0x22   :  { %s76_s14 = scalar_lea.vmem [#allocation7], %s676_s5  ;;  %s678_s6 = smov (%p85_p2, %s349_s6), 0 }
  0x23   :  { %v77_v5 = vld [vmem:[%s76_s14] sm:$0x1]  ;;  %s86_s15 = scalar_select %p85_p2, %s515_s27, 0  ;;  %v79_v6 = vstv %s78_s12 }
  0x24   :  { %vm80_vm1 = vcmp.eq.s32.totalorder %v79_v6, 1  ;;  %p115_p4 = scmp.lt.s32.totalorder %s519_s29, 32  ;;  %s353_s16 = sadd.s32 4294967264, %s519_s29 }
  0x25   :  { %v81_v7 = vsel %vm80_vm1, %v73_v4, %v77_v5  ;;  %s93_s17 = scalar_select %p85_p2, 1, 0 }
  0x26   :  { %82 = vst [vmem:[#allocation9 + $0x1] sm:$0x1] %v81_v7  ;;  %s87_s18 = scalar_lea.vmem [#allocation4], %s86_s15  ;;  %s91_s19 = scalar_lea.vmem [#allocation7], %s678_s6 }
  0x27   :  { %v88_v8 = vld [vmem:[%s87_s18] sm:$0x1]  ;;  %s101_s20 = scalar_select %p100_p3, %s517_s28, 0  ;;  %v94_v10 = vstv %s93_s17 }
  0x28   :  { %v92_v9 = vld [vmem:[%s91_s19] sm:$0x1]  ;;  %s680_s11 = smov (%p100_p3, %s351_s11), 0  ;;  %vm95_vm2 = vcmp.eq.s32.totalorder %v94_v10, 1  ;;  %p130_p5 = scmp.lt.s32.totalorder %s521_s30, 32 }
  0x29   :  { %v96_v11 = vsel %vm95_vm2, %v88_v8, %v92_v9  ;;  %s355_s21 = sadd.s32 4294967264, %s521_s30  ;;  %s102_s0 = scalar_lea.vmem [#allocation4], %s101_s20 }
  0x2a   :  { %97 = vst [vmem:[#allocation9 + $0x2] sm:$0x1] %v96_v11  ;;  %s108_s22 = scalar_select %p100_p3, 1, 0  ;;  %v103_v12 = vld [vmem:[%s102_s0] sm:$0x1] }
  0x2b   :  { %s106_s25 = scalar_lea.vmem [#allocation7], %s680_s11  ;;  %s682_s16 = smov (%p115_p4, %s353_s16), 0 }
  0x2c   :  { %v107_v13 = vld [vmem:[%s106_s25] sm:$0x1]  ;;  %s116_s26 = scalar_select %p115_p4, %s519_s29, 0  ;;  %v109_v14 = vstv %s108_s22 }
  0x2d   :  { %vm110_vm3 = vcmp.eq.s32.totalorder %v109_v14, 1  ;;  %s553_s1 = sld [smem:[#allocation3 + $0x6]]  ;;  %s121_s4 = scalar_lea.vmem [#allocation7], %s682_s16 }
  0x2e   :  { %v111_v15 = vsel %vm110_vm3, %v103_v12, %v107_v13  ;;  %s555_s2 = sld [smem:[#allocation3 + $0x7]]  ;;  %s117_s28 = scalar_lea.vmem [#allocation4], %s116_s26  ;;  %v122_v17 = vld [vmem:[%s121_s4] sm:$0x1] }
  0x2f   :  { %112 = vst [vmem:[#allocation9 + $0x3] sm:$0x1] %v111_v15  ;;  %s123_s27 = scalar_select %p115_p4, 1, 0  ;;  %v118_v16 = vld [vmem:[%s117_s28] sm:$0x1] }
  0x30   :  { %s131_s5 = scalar_select %p130_p5, %s521_s30, 0 }
  0x31   :  { %v124_v18 = vstv %s123_s27  ;;  %s684_s21 = smov (%p130_p5, %s355_s21), 0  ;;  %s564_s6 = sld [smem:[#allocation3 + $0x8]] }
  0x32   :  { %vm125_vm4 = vcmp.eq.s32.totalorder %v124_v18, 1  ;;  %s138_s29 = scalar_select %p130_p5, 1, 0 }
  0x33   :  { %v126_v19 = vsel %vm125_vm4, %v118_v16, %v122_v17  ;;  %p145_p6 = scmp.lt.s32.totalorder %s553_s1, 32  ;;  %s132_s7 = scalar_lea.vmem [#allocation4], %s131_s5 }
  0x34   :  { %127 = vst [vmem:[#allocation9 + $0x4] sm:$0x1] %v126_v19  ;;  %v133_v20 = vld [vmem:[%s132_s7] sm:$0x1]  ;;  %s136_s8 = scalar_lea.vmem [#allocation7], %s684_s21  ;;  %v139_v22 = vstv %s138_s29  ;;  %s357_s10 = sadd.s32 4294967264, %s553_s1 }
  0x35   :  { %v137_v21 = vld [vmem:[%s136_s8] sm:$0x1]  ;;  %s146_s9 = scalar_select %p145_p6, %s553_s1, 0  ;;  %vm140_vm5 = vcmp.eq.s32.totalorder %v139_v22, 1 }
  0x36   :  { %p160_p7 = scmp.lt.s32.totalorder %s555_s2, 32  ;;  %s359_s11 = sadd.s32 4294967264, %s555_s2  ;;  %v141_v23 = vsel %vm140_vm5, %v133_v20, %v137_v21 }
  0x37   :  { %s686_s10 = smov (%p145_p6, %s357_s10), 0  ;;  %142 = vst [vmem:[#allocation9 + $0x5] sm:$0x1] %v141_v23  ;;  %s147_s12 = scalar_lea.vmem [#allocation4], %s146_s9 }
  0x38   :  { %s153_s30 = scalar_select %p145_p6, 1, 0  ;;  %v148_v24 = vld [vmem:[%s147_s12] sm:$0x1] }
  0x39   :  { %p175_p8 = scmp.lt.s32.totalorder %s564_s6, 32  ;;  %s151_s13 = scalar_lea.vmem [#allocation7], %s686_s10 }
  0x3a   :  { %v152_v25 = vld [vmem:[%s151_s13] sm:$0x1]  ;;  %v154_v26 = vstv %s153_s30  ;;  %s161_s14 = scalar_select %p160_p7, %s555_s2, 0 }
  0x3b   :  { %vm155_vm6 = vcmp.eq.s32.totalorder %v154_v26, 1  ;;  %s688_s11 = smov (%p160_p7, %s359_s11), 0  ;;  %s361_s15 = sadd.s32 4294967264, %s564_s6 }
  0x3c   :  { %v156_v27 = vsel %vm155_vm6, %v148_v24, %v152_v25  ;;  %s168_s16 = scalar_select %p160_p7, 1, 0 }
  0x3d   :  { %157 = vst [vmem:[#allocation9 + $0x6] sm:$0x1] %v156_v27  ;;  %s162_s17 = scalar_lea.vmem [#allocation4], %s161_s14  ;;  %s166_s18 = scalar_lea.vmem [#allocation7], %s688_s11 }
  0x3e   :  { %v163_v28 = vld [vmem:[%s162_s17] sm:$0x1]  ;;  %s176_s19 = scalar_select %p175_p8, %s564_s6, 0  ;;  %v169_v30 = vstv %s168_s16 }
  0x3f   :  { %v167_v29 = vld [vmem:[%s166_s18] sm:$0x1]  ;;  %s690_s15 = smov (%p175_p8, %s361_s15), 0  ;;  %vm170_vm7 = vcmp.eq.s32.totalorder %v169_v30, 1  ;;  %s362_s20 = sld [smem:[#allocation3 + $0x9]] }
  0x40   :  { %v171_v31 = vsel %vm170_vm7, %v163_v28, %v167_v29  ;;  %s593_s21 = sld [smem:[#allocation3 + $0xa]]  ;;  %s177_s0 = scalar_lea.vmem [#allocation4], %s176_s19 }
  0x41   :  { %172 = vst [vmem:[#allocation9 + $0x7] sm:$0x1] %v171_v31  ;;  %s183_s22 = scalar_select %p175_p8, 1, 0  ;;  %v178_v32 = vld [vmem:[%s177_s0] sm:$0x1] }
  0x42   :  { %s181_s25 = scalar_lea.vmem [#allocation7], %s690_s15  ;;  %s597_s26 = sld [smem:[#allocation3 + $0xb]] }
  0x43   :  { %v182_v33 = vld [vmem:[%s181_s25] sm:$0x1]  ;;  %v184_v34 = vstv %s183_s22  ;;  %s599_s1 = sld [smem:[#allocation3 + $0xc]] }
  0x44   :  { %vm185_vm8 = vcmp.eq.s32.totalorder %v184_v34, 1  ;;  %s601_s2 = sld [smem:[#allocation3 + $0xd]] }
  0x45   :  { %v186_v35 = vsel %vm185_vm8, %v178_v32, %v182_v33  ;;  %p190_p9 = scmp.lt.s32.totalorder %s362_s20, 32  ;;  %s363_s27 = sadd.s32 4294967264, %s362_s20 }
  0x46   :  { %187 = vst [vmem:[#allocation9 + $0x8] sm:$0x1] %v186_v35  ;;  %p205_p10 = scmp.lt.s32.totalorder %s593_s21, 32  ;;  %s365_s28 = sadd.s32 4294967264, %s593_s21 }
  0x47   :  { %s692_s20 = smov (!%p190_p9, %s362_s20), 0  ;;  %s694_s27 = smov (%p190_p9, %s363_s27), 0 }
  0x48   :  { %p220_p11 = scmp.lt.s32.totalorder %s597_s26, 32  ;;  %s367_s4 = sadd.s32 4294967264, %s597_s26 }
  0x49   :  { %s198_s5 = scalar_select %p190_p9, 1, 0 }
  0x4a   :  { %s192_s6 = scalar_lea.vmem [#allocation4], %s692_s20  ;;  %s196_s29 = scalar_lea.vmem [#allocation7], %s694_s27 }
  0x4b   :  { %v193_v36 = vld [vmem:[%s192_s6] sm:$0x1]  ;;  %s206_s7 = scalar_select %p205_p10, %s593_s21, 0  ;;  %v199_v38 = vstv %s198_s5 }
  0x4c   :  { %v197_v37 = vld [vmem:[%s196_s29] sm:$0x1]  ;;  %s696_s28 = smov (%p205_p10, %s365_s28), 0  ;;  %vm200_vm9 = vcmp.eq.s32.totalorder %v199_v38, 1  ;;  %p235_p12 = scmp.lt.s32.totalorder %s599_s1, 32 }
  0x4d   :  { %v201_v39 = vsel %vm200_vm9, %v193_v36, %v197_v37  ;;  %s369_s8 = sadd.s32 4294967264, %s599_s1  ;;  %s207_s10 = scalar_lea.vmem [#allocation4], %s206_s7 }
  0x4e   :  { %202 = vst [vmem:[#allocation9 + $0x9] sm:$0x1] %v201_v39  ;;  %s213_s9 = scalar_select %p205_p10, 1, 0  ;;  %v208_v40 = vld [vmem:[%s207_s10] sm:$0x1] }
  0x4f   :  { %s211_s11 = scalar_lea.vmem [#allocation7], %s696_s28  ;;  %s698_s4 = smov (%p220_p11, %s367_s4), 0 }
  0x50   :  { %v212_v41 = vld [vmem:[%s211_s11] sm:$0x1]  ;;  %s221_s30 = scalar_select %p220_p11, %s597_s26, 0  ;;  %v214_v42 = vstv %s213_s9 }
  0x51   :  { %vm215_vm10 = vcmp.eq.s32.totalorder %v214_v42, 1  ;;  %p250_p13 = scmp.lt.s32.totalorder %s601_s2, 32  ;;  %s371_s12 = sadd.s32 4294967264, %s601_s2 }
  0x52   :  { %v216_v43 = vsel %vm215_vm10, %v208_v40, %v212_v41  ;;  %s228_s13 = scalar_select %p220_p11, 1, 0 }
  0x53   :  { %217 = vst [vmem:[#allocation9 + $0xa] sm:$0x1] %v216_v43  ;;  %s222_s14 = scalar_lea.vmem [#allocation4], %s221_s30  ;;  %s226_s15 = scalar_lea.vmem [#allocation7], %s698_s4 }
  0x54   :  { %v223_v44 = vld [vmem:[%s222_s14] sm:$0x1]  ;;  %s236_s16 = scalar_select %p235_p12, %s599_s1, 0  ;;  %v229_v46 = vstv %s228_s13 }
  0x55   :  { %v227_v45 = vld [vmem:[%s226_s15] sm:$0x1]  ;;  %s700_s8 = smov (%p235_p12, %s369_s8), 0  ;;  %vm230_vm11 = vcmp.eq.s32.totalorder %v229_v46, 1  ;;  %s630_s17 = sld [smem:[#allocation3 + $0xe]] }
  0x56   :  { %v231_v47 = vsel %vm230_vm11, %v223_v44, %v227_v45  ;;  %s632_s18 = sld [smem:[#allocation3 + $0xf]]  ;;  %s237_s20 = scalar_lea.vmem [#allocation4], %s236_s16 }
  0x57   :  { %232 = vst [vmem:[#allocation9 + $0xb] sm:$0x1] %v231_v47  ;;  %s243_s19 = scalar_select %p235_p12, 1, 0  ;;  %v238_v48 = vld [vmem:[%s237_s20] sm:$0x1] }
  0x58   :  { %s241_s21 = scalar_lea.vmem [#allocation7], %s700_s8  ;;  %s702_s12 = smov (%p250_p13, %s371_s12), 0 }
  0x59   :  { %v242_v49 = vld [vmem:[%s241_s21] sm:$0x1]  ;;  %s251_s22 = scalar_select %p250_p13, %s601_s2, 0  ;;  %v244_v50 = vstv %s243_s19 }
  0x5a   :  { %vm245_vm12 = vcmp.eq.s32.totalorder %v244_v50, 1  ;;  %s258_s0 = scalar_select %p250_p13, 1, 0 }
  0x5b   :  { %v246_v51 = vsel %vm245_vm12, %v238_v48, %v242_v49  ;;  %p265_p0 = scmp.lt.s32.totalorder %s630_s17, 32  ;;  %s252_s25 = scalar_lea.vmem [#allocation4], %s251_s22 }
  0x5c   :  { %247 = vst [vmem:[#allocation9 + $0xc] sm:$0x1] %v246_v51  ;;  %v253_v52 = vld [vmem:[%s252_s25] sm:$0x1]  ;;  %s256_s26 = scalar_lea.vmem [#allocation7], %s702_s12  ;;  %v259_v54 = vstv %s258_s0  ;;  %s373_s27 = sadd.s32 4294967264, %s630_s17 }
  0x5d   :  { %v257_v53 = vld [vmem:[%s256_s26] sm:$0x1]  ;;  %s266_s1 = scalar_select %p265_p0, %s630_s17, 0  ;;  %vm260_vm13 = vcmp.eq.s32.totalorder %v259_v54, 1 }
  0x5e   :  { %p280_p1 = scmp.lt.s32.totalorder %s632_s18, 32  ;;  %s375_s28 = sadd.s32 4294967264, %s632_s18  ;;  %v261_v55 = vsel %vm260_vm13, %v253_v52, %v257_v53 }
  0x5f   :  { %s704_s27 = smov (%p265_p0, %s373_s27), 0  ;;  %262 = vst [vmem:[#allocation9 + $0xd] sm:$0x1] %v261_v55  ;;  %s267_s4 = scalar_lea.vmem [#allocation4], %s266_s1 }
  0x60   :  { %s273_s2 = scalar_select %p265_p0, 1, 0  ;;  %v268_v56 = vld [vmem:[%s267_s4] sm:$0x1] }
  0x61   :  { %s271_s5 = scalar_lea.vmem [#allocation7], %s704_s27  ;;  %s706_s28 = smov (%p280_p1, %s375_s28), 0 }
  0x62   :  { %v272_v57 = vld [vmem:[%s271_s5] sm:$0x1]  ;;  %v274_v58 = vstv %s273_s2  ;;  %s281_s6 = scalar_select %p280_p1, %s632_s18, 0 }
  0x63   :  { %vm275_vm14 = vcmp.eq.s32.totalorder %v274_v58, 1  ;;  %s299_s8 = sshll.u32 %s670_s3, 4  ;;  %s479_s9 = smov [#allocation9]   ;;  %s300_s8 = int_to_ptr.hbm [resolvable:$true] %s299_s8 }
  0x64   :  { %v276_v59 = vsel %vm275_vm14, %v268_v56, %v272_v57  ;;  %s297_s10 = sshll.u32 %s479_s9, 4  ;;  %s282_s30 = scalar_lea.vmem [#allocation4], %s281_s6  ;;  %s298_s10 = int_to_ptr.vmem [resolvable:$true] %s297_s10 }
  0x65   :  { %277 = vst [vmem:[#allocation9 + $0xe] sm:$0x1] %v276_v59  ;;  %s288_s11 = scalar_select %p280_p1, 1, 0  ;;  %v283_v60 = vld [vmem:[%s282_s30] sm:$0x1] }
  0x66   :  { %s286_s12 = scalar_lea.vmem [#allocation7], %s706_s28 }
  0x67   :  { %v287_v61 = vld [vmem:[%s286_s12] sm:$0x1]  ;;  %v289_v62 = vstv %s288_s11 }
  0x68   :  { %vm290_vm15 = vcmp.eq.s32.totalorder %v289_v62, 1 }
  0x69   :  { %v291_v63 = vsel %vm290_vm15, %v283_v60, %v287_v61 }
  0x6a   :  { %292 = vst [vmem:[#allocation9 + $0xf] sm:$0x1] %v291_v63 }
  0x6b   :  { %305 = dma.vmem_to_hbm [thread:$0]  %s298_s10, 256, %s300_s8, [#allocation6], %s476_s23, %s476_s23, %s477_s24  }
  0x6c   :  { %472 = dma.done.wait [#allocation6], 256  }
  0x6d   :  { %473 = vsyncadd [#allocation6], 4294967040 }
  0x6e   :  { %310 = vsyncpa [#allocation5], 1 }
  0x6f   :  { %311 = vsyncpa [#allocation8], 1 }
  0x70   :  { %312 = vsyncpa [#allocation6], 1 }

</bundles_post_ra>
